<compile_context>
chip_gen: v7x
topology: tpu7x:2x2x1
jax: 0.10.0
libtpu: 0.0.40
codegen_flags: <defaults>
</compile_context>

<pallas_src>
import jax
import jax.numpy as jnp
from jax.experimental import pallas as pl
from jax.experimental.pallas import tpu as pltpu

N_MODELS = 3


def _round_up(n, m):
    return ((n + m - 1) // m) * m


def tri_mentoring_kernel(x_ref, w1_ref, b1_ref, w2_ref, b2_ref, w3_ref, b3_ref,
                         o_ref):
    """One batch-lane tile of the fused TriMentoring ensemble forward.

    x_ref : (n_dim, TB)    input tile, batch on the LANE axis (compute dtype)
    w1_ref: (3*h0, n_dim)  compute dtype    b1_ref: (3*h0, 1)  f32
    w2_ref: (3*h1, 3*h0)   compute dtype    b2_ref: (3*h1, 1)  f32 (block-diag)
    w3_ref: (1, 3*h1)      compute dtype    b3_ref: (1, 1)     f32 (mean folded)
    o_ref : (1, TB)        ensemble-mean output, batch on the LANE axis
    """
    cdt = w1_ref.dtype                      # bf16 (default) or f32
    x = x_ref[...].astype(cdt)
    # layer 0: fused Linear for all 3 members — one wide MXU matmul, f32 accum.
    h = jnp.dot(w1_ref[...], x, preferred_element_type=jnp.float32)
    h = jnp.maximum(h + b1_ref[...], 0.0)               # bias + ReLU in f32 (VPU)
    # layer 1: fused block-diagonal Linear + ReLU.
    h = jnp.dot(w2_ref[...], h.astype(cdt), preferred_element_type=jnp.float32)
    h = jnp.maximum(h + b2_ref[...], 0.0)
    # output heads + ensemble mean (folded into w3/b3) -> (1, TB), lane-dense.
    y = jnp.dot(w3_ref[...], h.astype(cdt), preferred_element_type=jnp.float32)
    o_ref[...] = (y + b3_ref[...]).astype(o_ref.dtype)


def fuse_params(params, compute_dtype=jnp.bfloat16):
    """Fuse the 3 stacked members into one wide, transposed MLP.

    Weights are returned in `compute_dtype` (bf16 by default — MXU operands);
    biases stay f32 (they are added after the f32-accumulating matmul).
    """
    w1, b1 = params["w1"], params["b1"]   # (3, n_dim, h0), (3, h0)
    w2, b2 = params["w2"], params["b2"]   # (3, h0, h1),    (3, h1)
    w3, b3 = params["w3"], params["b3"]   # (3, h1, 1),     (3, 1)
    n_models, _, h0 = w1.shape
    h1 = w2.shape[-1]

    # (3*h0, n_dim): member m occupies rows [m*h0, (m+1)*h0).
    w1f = jnp.concatenate([w1[m].T for m in range(n_models)], axis=0)
    b1f = jnp.concatenate([b1[m] for m in range(n_models)], axis=0)[:, None]

    # Block-diagonal (3*h1, 3*h0); off-diagonal zeros are exact under ReLU.
    # (Free while 3*h fits one MXU tile — see TODO in the header for larger h.)
    w2f = jnp.zeros((n_models * h1, n_models * h0), jnp.float32)
    for m in range(n_models):
        w2f = w2f.at[m * h1:(m + 1) * h1, m * h0:(m + 1) * h0].set(w2[m].T)
    b2f = jnp.concatenate([b2[m] for m in range(n_models)], axis=0)[:, None]

    # (1, 3*h1) head with the 1/3 mean folded in; scalar bias likewise.
    w3f = (jnp.concatenate([w3[m][:, 0] for m in range(n_models)], axis=0)
           / n_models)[None, :]
    b3f = (jnp.sum(b3) / n_models).reshape(1, 1)

    cdt = compute_dtype
    return (w1f.astype(cdt), b1f.astype(jnp.float32),
            w2f.astype(cdt), b2f.astype(jnp.float32),
            w3f.astype(cdt), b3f.astype(jnp.float32))


def tri_mentoring_forward(x, params, *, max_batch_tile=4096,
                          compute_dtype=jnp.bfloat16):
    """params = dict(w1, b1, w2, b2, w3, b3) with stacked leading axis of 3."""
    batch, n_dim = x.shape
    w1f, b1f, w2f, b2f, w3f, b3f = fuse_params(params, compute_dtype)
    h0x3, h1x3 = w1f.shape[0], w2f.shape[0]

    # --- batch-lane tile: as large as possible (amortizes the ~0.35 us/step
    # grid overhead), multiple of 128, growing with the batch up to
    # `max_batch_tile` (sweep 2048-8192 on large batches).
    tile = min(_round_up(batch, 128), max(128, _round_up(max_batch_tile, 128)))
    # Keep the grid at >= 2 steps so the "parallel" axis feeds BOTH v7x
    # TensorCores; on single-TC v5e/v6e this costs at most one extra step.
    lane_batch = _round_up(batch, 128)
    if lane_batch >= 256:
        tile = max(128, min(tile, _round_up(lane_batch // 2, 128)))
    padded = _round_up(batch, tile)
    grid = (padded // tile,)

    # --- input plumbing: transpose (batch -> lane axis) + cast to the compute
    # dtype + pad fuse into ONE XLA op, i.e. a single extra read+write of x
    # (and the write is bf16, half the bytes). Pad is skipped when aligned.
    # TODO(synk): callers that can hand over x feature-major (n_dim, batch) in
    # bf16 skip this HBM round trip entirely.
    xt = x.T.astype(compute_dtype)
    if padded != batch:
        xt = jnp.pad(xt, ((0, 0), (0, padded - batch)))

    # --- explicit VMEM budget so large tiles compile on v5e/v6e/v7x alike
    # (defaults: 16/32/32 MiB scoped; v7x has only 64 MiB physical).
    cbytes = jnp.dtype(compute_dtype).itemsize
    est = (2 * n_dim * tile * cbytes            # double-buffered input blocks
           + 2 * tile * 4                       # double-buffered output blocks
           + 4 * (h0x3 + h1x3) * tile * 4       # f32 hidden intermediates + temps
           + (w1f.size + w2f.size + w3f.size) * cbytes
           + (b1f.size + b2f.size + b3f.size) * 4)
    vmem_limit = int(min(max(est + (4 << 20), 32 << 20), 48 << 20))

    # Grid-invariant (constant index_map) blocks: weights stay VMEM-resident.
    full = lambda a: pl.BlockSpec(a.shape, lambda i: (0, 0))

    out = pl.pallas_call(
        tri_mentoring_kernel,
        out_shape=jax.ShapeDtypeStruct((1, padded), x.dtype),
        grid_spec=pltpu.PrefetchScalarGridSpec(
            num_scalar_prefetch=0,
            grid=grid,
            in_specs=[
                pl.BlockSpec((n_dim, tile), lambda i: (0, i)),
                full(w1f), full(b1f),
                full(w2f), full(b2f),
                full(w3f), full(b3f),
            ],
            out_specs=pl.BlockSpec((1, tile), lambda i: (0, i)),
        ),
        compiler_params=pltpu.CompilerParams(
            dimension_semantics=("parallel",),
            vmem_limit_bytes=vmem_limit),
    )(xt, w1f, b1f, w2f, b2f, w3f, b3f)

    # Lane-dense slab back to the module's (batch, 1) layout (free plumbing).
    return out[0, :batch].reshape(-1, 1)


def init_params(key, n_dim, hidden_size):
    """Deterministic init mimicking PyTorch Linear (uniform +-1/sqrt(fan_in)),
    stacked for the 3 ensemble members. Weights stored as (in, out), f32."""
    assert len(hidden_size) == 2
    h0, h1 = hidden_size
    dims = [(n_dim, h0), (h0, h1), (h1, 1)]
    params = {}
    for li, (fan_in, fan_out) in enumerate(dims, start=1):
        kw, kb, key = jax.random.split(key, 3)
        bound = 1.0 / jnp.sqrt(float(fan_in))
        params[f"w{li}"] = jax.random.uniform(
            kw, (N_MODELS, fan_in, fan_out), jnp.float32, -bound, bound)
        params[f"b{li}"] = jax.random.uniform(
            kb, (N_MODELS, fan_out), jnp.float32, -bound, bound)
    return params


def reference_forward(x, params):
    """Plain-JAX f32 reference of TriMentoringModel.forward for validation."""
    outs = []
    for m in range(N_MODELS):
        h = jnp.maximum(x @ params["w1"][m] + params["b1"][m], 0.0)
        h = jnp.maximum(h @ params["w2"][m] + params["b2"][m], 0.0)
        outs.append(h @ params["w3"][m] + params["b3"][m])
    y = jnp.concatenate(outs, axis=1)           # (batch, 3)
    return y.mean(axis=1).reshape(-1, 1)        # (batch, 1)


if __name__ == "__main__":
    key = jax.random.PRNGKey(0)
    kx, kx2, kp = jax.random.split(key, 3)

    n_dim = 16
    hidden_size = [32, 32]
    params = init_params(kp, n_dim, hidden_size)

    # --- small batch, default bf16 operands (f32 accumulation), single tile ---
    batch = 8
    x = jax.random.normal(kx, (batch, n_dim), jnp.float32)
    ref = reference_forward(x, params)
    out = jax.block_until_ready(tri_mentoring_forward(x, params))
    assert out.shape == (batch, 1)
    assert jnp.allclose(out, ref, atol=2e-2, rtol=2e-2), (out, ref)

    # --- same batch, f32 operands: tight agreement with the f32 reference ---
    out_f32 = jax.block_until_ready(
        tri_mentoring_forward(x, params, compute_dtype=jnp.float32))
    assert jnp.allclose(out_f32, ref, atol=1e-4, rtol=1e-4), (out_f32, ref)

    # --- non-multiple batch: padding + >=2-step grid (v7x two-TC cap), bf16 ---
    batch2 = 300
    x2 = jax.random.normal(kx2, (batch2, n_dim), jnp.float32)
    ref2 = reference_forward(x2, params)
    out2 = jax.block_until_ready(tri_mentoring_forward(x2, params))
    assert out2.shape == (batch2, 1)
    assert jnp.allclose(out2, ref2, atol=2e-2, rtol=2e-2), (out2, ref2)

    # --- explicit small tile cap: 3-step grid, f32 for tight checking ---
    out3 = jax.block_until_ready(
        tri_mentoring_forward(x2, params, max_batch_tile=128,
                              compute_dtype=jnp.float32))
    assert jnp.allclose(out3, ref2, atol=1e-4, rtol=1e-4), (out3, ref2)

    print("KERNEL_OK")
</pallas_src>

<mosaic_0001>
module attributes {stable_mosaic.version = 11 : i64} {
  func.func @tri_mentoring_kernel(%arg0: i32, %arg1: memref<16x128xbf16, #tpu.memory_space<vmem>>, %arg2: memref<96x16xbf16, #tpu.memory_space<vmem>>, %arg3: memref<96x1xf32, #tpu.memory_space<vmem>>, %arg4: memref<96x96xbf16, #tpu.memory_space<vmem>>, %arg5: memref<96x1xf32, #tpu.memory_space<vmem>>, %arg6: memref<1x96xbf16, #tpu.memory_space<vmem>>, %arg7: memref<1x1xf32, #tpu.memory_space<vmem>>, %arg8: memref<1x128xf32, #tpu.memory_space<vmem>>) attributes {dimension_semantics = [#tpu.dimension_semantics<parallel>], iteration_bounds = array<i64: 1>, scalar_prefetch = 0 : i64, scratch_operands = 0 : i64, tpu.core_type = #tpu.core_type<tc>, window_params = [{transform_indices = @transform_0, window_bounds = array<i64: 16, 128>}, {pipeline_mode = #tpu.pipeline_mode<synchronous>, transform_indices = @transform_1, window_bounds = array<i64: 96, 16>}, {pipeline_mode = #tpu.pipeline_mode<synchronous>, transform_indices = @transform_2, window_bounds = array<i64: 96, 1>}, {pipeline_mode = #tpu.pipeline_mode<synchronous>, transform_indices = @transform_3, window_bounds = array<i64: 96, 96>}, {pipeline_mode = #tpu.pipeline_mode<synchronous>, transform_indices = @transform_4, window_bounds = array<i64: 96, 1>}, {pipeline_mode = #tpu.pipeline_mode<synchronous>, transform_indices = @transform_5, window_bounds = array<i64: 1, 96>}, {pipeline_mode = #tpu.pipeline_mode<synchronous>, transform_indices = @transform_6, window_bounds = array<i64: 1, 1>}, {transform_indices = @transform_7, window_bounds = array<i64: 1, 128>}]} {
    %c0 = arith.constant 0 : index
    %c0_0 = arith.constant 0 : index
    %0 = vector.load %arg1[%c0, %c0_0] : memref<16x128xbf16, #tpu.memory_space<vmem>>, vector<16x128xbf16>
    %c0_1 = arith.constant 0 : index
    %c0_2 = arith.constant 0 : index
    %1 = vector.load %arg2[%c0_1, %c0_2] : memref<96x16xbf16, #tpu.memory_space<vmem>>, vector<96x16xbf16>
    %cst = arith.constant dense<0.000000e+00> : vector<96x128xf32>
    %2 = tpu.matmul %1, %0, %cst {dimension_numbers = #tpu.dot_dimension_numbers<[1], [0], [0], [1], [0, 0, 1, 1], [], []>} : vector<96x16xbf16>, vector<16x128xbf16>, vector<96x128xf32> -> vector<96x128xf32>
    %c0_3 = arith.constant 0 : index
    %c0_4 = arith.constant 0 : index
    %3 = vector.load %arg3[%c0_3, %c0_4] : memref<96x1xf32, #tpu.memory_space<vmem>>, vector<96x1xf32>
    %4 = vector.broadcast %3 : vector<96x1xf32> to vector<96x128xf32>
    %5 = arith.addf %2, %4 : vector<96x128xf32>
    %cst_5 = arith.constant 0.000000e+00 : f32
    %6 = vector.broadcast %cst_5 : f32 to vector<96x128xf32>
    %7 = arith.maximumf %5, %6 : vector<96x128xf32>
    %c0_6 = arith.constant 0 : index
    %c0_7 = arith.constant 0 : index
    %8 = vector.load %arg4[%c0_6, %c0_7] : memref<96x96xbf16, #tpu.memory_space<vmem>>, vector<96x96xbf16>
    %9 = arith.truncf %7 : vector<96x128xf32> to vector<96x128xbf16>
    %cst_8 = arith.constant dense<0.000000e+00> : vector<96x128xf32>
    %10 = tpu.matmul %8, %9, %cst_8 {dimension_numbers = #tpu.dot_dimension_numbers<[1], [0], [0], [1], [0, 0, 1, 1], [], []>} : vector<96x96xbf16>, vector<96x128xbf16>, vector<96x128xf32> -> vector<96x128xf32>
    %c0_9 = arith.constant 0 : index
    %c0_10 = arith.constant 0 : index
    %11 = vector.load %arg5[%c0_9, %c0_10] : memref<96x1xf32, #tpu.memory_space<vmem>>, vector<96x1xf32>
    %12 = vector.broadcast %11 : vector<96x1xf32> to vector<96x128xf32>
    %13 = arith.addf %10, %12 : vector<96x128xf32>
    %cst_11 = arith.constant 0.000000e+00 : f32
    %14 = vector.broadcast %cst_11 : f32 to vector<96x128xf32>
    %15 = arith.maximumf %13, %14 : vector<96x128xf32>
    %c0_12 = arith.constant 0 : index
    %c0_13 = arith.constant 0 : index
    %16 = vector.load %arg6[%c0_12, %c0_13] : memref<1x96xbf16, #tpu.memory_space<vmem>>, vector<1x96xbf16>
    %17 = arith.truncf %15 : vector<96x128xf32> to vector<96x128xbf16>
    %cst_14 = arith.constant dense<0.000000e+00> : vector<1x128xf32>
    %18 = tpu.matmul %16, %17, %cst_14 {dimension_numbers = #tpu.dot_dimension_numbers<[1], [0], [0], [1], [0, 0, 1, 1], [], []>} : vector<1x96xbf16>, vector<96x128xbf16>, vector<1x128xf32> -> vector<1x128xf32>
    %c0_15 = arith.constant 0 : index
    %c0_16 = arith.constant 0 : index
    %19 = vector.load %arg7[%c0_15, %c0_16] : memref<1x1xf32, #tpu.memory_space<vmem>>, vector<1x1xf32>
    %20 = vector.broadcast %19 : vector<1x1xf32> to vector<1x128xf32>
    %21 = arith.addf %18, %20 : vector<1x128xf32>
    %c0_17 = arith.constant 0 : index
    %c0_18 = arith.constant 0 : index
    %22 = vector.load %arg8[%c0_17, %c0_18] : memref<1x128xf32, #tpu.memory_space<vmem>>, vector<1x128xf32>
    tpu.vector_store %arg8[%c0_17, %c0_18], %21 {strides = array<i32>} : memref<1x128xf32, #tpu.memory_space<vmem>>, vector<1x128xf32>,
    return
  }
  func.func @transform_0(%arg0: i32) -> (i32, i32) {
    %c0_i32 = arith.constant 0 : i32
    %c0_i32_0 = arith.constant 0 : i32
    return %c0_i32, %arg0 : i32, i32
  }
  func.func @transform_1(%arg0: i32) -> (i32, i32) {
    %c0_i32 = arith.constant 0 : i32
    %c0_i32_0 = arith.constant 0 : i32
    %c0_i32_1 = arith.constant 0 : i32
    return %c0_i32, %c0_i32_0 : i32, i32
  }
  func.func @transform_2(%arg0: i32) -> (i32, i32) {
    %c0_i32 = arith.constant 0 : i32
    %c0_i32_0 = arith.constant 0 : i32
    %c0_i32_1 = arith.constant 0 : i32
    return %c0_i32, %c0_i32_0 : i32, i32
  }
  func.func @transform_3(%arg0: i32) -> (i32, i32) {
    %c0_i32 = arith.constant 0 : i32
    %c0_i32_0 = arith.constant 0 : i32
    %c0_i32_1 = arith.constant 0 : i32
    return %c0_i32, %c0_i32_0 : i32, i32
  }
  func.func @transform_4(%arg0: i32) -> (i32, i32) {
    %c0_i32 = arith.constant 0 : i32
    %c0_i32_0 = arith.constant 0 : i32
    %c0_i32_1 = arith.constant 0 : i32
    return %c0_i32, %c0_i32_0 : i32, i32
  }
  func.func @transform_5(%arg0: i32) -> (i32, i32) {
    %c0_i32 = arith.constant 0 : i32
    %c0_i32_0 = arith.constant 0 : i32
    %c0_i32_1 = arith.constant 0 : i32
    return %c0_i32, %c0_i32_0 : i32, i32
  }
  func.func @transform_6(%arg0: i32) -> (i32, i32) {
    %c0_i32 = arith.constant 0 : i32
    %c0_i32_0 = arith.constant 0 : i32
    %c0_i32_1 = arith.constant 0 : i32
    return %c0_i32, %c0_i32_0 : i32, i32
  }
  func.func @transform_7(%arg0: i32) -> (i32, i32) {
    %c0_i32 = arith.constant 0 : i32
    %c0_i32_0 = arith.constant 0 : i32
    return %c0_i32, %arg0 : i32, i32
  }
}

</mosaic_0001>

<bundles_post_ra>
// kernel: tpu_custom_call.1
= control target key start
LH: loop header
LB: loop body
LE: loop exit
PB: predicated region body
PF: predicated region fallthrough
CT: control target
= control target key end

     0   :  { %s913_s0 = inlined_call_operand.vmem [shape: bf16[16,128], index: 0, kind: input, shape index: {}]   ;;  %s914_s1 = inlined_call_operand.vmem [shape: bf16[96,16], index: 1, kind: input, shape index: {}]   ;;  %s915_s2 = inlined_call_operand.vmem [shape: f32[96,1], index: 2, kind: input, shape index: {}]   ;;  %s916_s3 = inlined_call_operand.vmem [shape: bf16[96,96], index: 3, kind: input, shape index: {}]   ;;  %s917_s4 = inlined_call_operand.vmem [shape: f32[96,1], index: 4, kind: input, shape index: {}]   ;;  %s918_s5 = inlined_call_operand.vmem [shape: bf16[1,96], index: 5, kind: input, shape index: {}]   ;;  %s919_s6 = inlined_call_operand.<no memory space> [shape: f32[1,1], index: 6, kind: input, shape index: {}]   ;;  %s920_s7 = inlined_call_operand.hbm [shape: f32[1,128], index: 7, kind: output, shape index: {}]  }
   0x1   :  { %v12_v0 = vstv %s919_s6 }
   0x2   :  { %13 = vst [vmem:[#allocation2] sm:$0x1] %v12_v0 }
   0x3   :  { %v683_v1 = vld [vmem:[%s913_s0] sm:$0xff]   ;;  %vm152_vm0 = vcmask 130048   ;;  %v685_v3 = vld [vmem:[%s914_s1 + $0x8] sm:$0xff]   ;;  %v720_v4 = vmov 0   ;;  %v686_v5 = vld [vmem:[%s914_s1 + $0x10] sm:$0xff]  }
   0x4   :  { %v684_v2 = vld [vmem:[%s914_s1] sm:$0xff]   ;;  %623 = vmatprep.subr.bf16.mxu0 %v683_v1  ;;  %681 = vset.pattern.permute.xlu0 %v720_v4  ;;  %v46_v7 = vld [vmem:[%s915_s2 + $0x10] sm:$0xff]  ;;  %v45_v8 = vld [vmem:[%s915_s2 + $0x8] sm:$0xff] }
   0x5   :  { %624 = vmatpush3.bf16.msra.mxu0 %v683_v1  ;;  %625 = vmatprep.mubr.msk.bf16.mxu0 %vm152_vm0, %v684_v2  ;;  %v44_v6 = vld [vmem:[%s915_s2] sm:$0xff]  ;;  %v47_v9 = vld [vmem:[%s915_s2 + $0x18] sm:$0xff]  ;;  %v49_v13 = vld [vmem:[%s915_s2 + $0x28] sm:$0xff] }
   0x6   :  { %682 = vset.pattern.permute.xlu1 %v720_v4  ;;  %58 = vperm.xlu0 %681, %v44_v6   ;;  %v687_v10 = vld [vmem:[%s914_s1 + $0x18] sm:$0xff]   ;;  %v688_v11 = vld [vmem:[%s914_s1 + $0x20] sm:$0xff]   ;;  %v50_v14 = vld [vmem:[%s915_s2 + $0x30] sm:$0xff] }
   0x7   :  { %68 = vperm.xlu1 %682, %v46_v7   ;;  %v48_v12 = vld [vmem:[%s915_s2 + $0x20] sm:$0xff]  ;;  %v51_v15 = vld [vmem:[%s915_s2 + $0x38] sm:$0xff]  ;;  %v689_v16 = vld [vmem:[%s914_s1 + $0x28] sm:$0xff]  }
   0x8   :  { %626 = vmatmul.mubr.msk.bf16.vlgmr.msra.gmra.mrb[0].mxu0 %vm152_vm0, %v685_v3 }
   0x9   :  { %629 = vmatprep.mubr.msk.bf16.mxu0 %vm152_vm0, %v686_v5 }
   0xa   :  { %63 = vperm.xlu0 %681, %v45_v8  }
   0xb   :  { %73 = vperm.xlu1 %682, %v47_v9  }
   0xe   :  { %78 = vperm.xlu0 %681, %v48_v12  }
   0xf   :  { %83 = vperm.xlu1 %682, %v49_v13  }
  0x10   :  { %630 = vmatmul.mubr.msk.bf16.gmra.mrb[4].mxu0 %vm152_vm0, %v687_v10 }
  0x11   :  { %633 = vmatprep.mubr.msk.bf16.mxu0 %vm152_vm0, %v688_v11 }
  0x12   :  { %14 = vsyncpa [#allocation4], 0  ;;  %88 = vperm.xlu0 %681, %v50_v14   ;;  %v52_v17 = vld [vmem:[%s915_s2 + $0x40] sm:$0xff]  ;;  %v53_v18 = vld [vmem:[%s915_s2 + $0x48] sm:$0xff]  ;;  %vm384_vm1 = vcmask 785408   ;;  %vm722_vm2 = vmmov 0  }
  0x13   :  { %93 = vperm.xlu1 %682, %v51_v15   ;;  %v54_v19 = vld [vmem:[%s915_s2 + $0x50] sm:$0xff]  ;;  %v55_v20 = vld [vmem:[%s915_s2 + $0x58] sm:$0xff]  ;;  %v282_v21 = vld [vmem:[%s917_s4] sm:$0xff]  ;;  %s723_s21 = smov [#allocation3]  }
  0x14   :  { %v283_v22 = vld [vmem:[%s917_s4 + $0x8] sm:$0xff]  ;;  %v284_v23 = vld [vmem:[%s917_s4 + $0x10] sm:$0xff]  ;;  %v285_v24 = vld [vmem:[%s917_s4 + $0x18] sm:$0xff]  ;;  %s563_s22 = sshll.u32 %s723_s21, 4  ;;  %s564_s22 = int_to_ptr.vmem [resolvable:$true] %s563_s22 }
  0x15   :  { %v286_v25 = vld [vmem:[%s917_s4 + $0x20] sm:$0xff]  ;;  %v287_v26 = vld [vmem:[%s917_s4 + $0x28] sm:$0xff]  ;;  %v288_v27 = vld [vmem:[%s917_s4 + $0x30] sm:$0xff]  ;;  %s696_s23 = scalar_lea.vmem %s564_s22, 16  ;;  %s700_s24 = scalar_lea.vmem %s564_s22, 32 }
  0x16   :  { %98 = vperm.xlu0 %681, %v52_v17   ;;  %v289_v28 = vld [vmem:[%s917_s4 + $0x38] sm:$0xff]  ;;  %v290_v29 = vld [vmem:[%s917_s4 + $0x40] sm:$0xff]  ;;  %v291_v30 = vld [vmem:[%s917_s4 + $0x48] sm:$0xff]  ;;  %p697_p0 = scmp.ne.s32.totalorder %s564_s22, %s696_s23  ;;  %p701_p1 = scmp.lt.s32.totalorder %s564_s22, %s564_s22 }
  0x17   :  { %103 = vperm.xlu1 %682, %v53_v18   ;;  %v292_v31 = vld [vmem:[%s917_s4 + $0x50] sm:$0xff]  ;;  %v293_v32 = vld [vmem:[%s917_s4 + $0x58] sm:$0xff]  ;;  %v503_v33 = vld [vmem:[#allocation2] sm:$0x1]  ;;  %p702_p2 = scmp.lt.s32.totalorder %s700_s24, %s696_s23 }
  0x18   :  { %634 = vmatmul.mubr.msk.bf16.gmra.mrb[8].mxu0 %vm152_vm0, %v689_v16  ;;  %v690_v34 = vld [vmem:[%s916_s3] sm:$0xff]  }
  0x19   :  { %649 = vmatprep.mubr.msk.bf16.mxu1 %vm384_vm1, %v690_v34  ;;  %p703_p3 = por %p702_p2, %p701_p1 }
  0x1a   :  { %108 = vperm.xlu0 %681, %v54_v19  }
  0x1b   :  { %113 = vperm.xlu1 %682, %v55_v20   ;;  %p704_p4 = pnand %p703_p3, %p697_p0 }
  0x1e   :  { %296 = vperm.xlu0 %681, %v282_v21  }
  0x1f   :  { %301 = vperm.xlu1 %682, %v283_v22  }
  0x22   :  { %306 = vperm.xlu0 %681, %v284_v23  }
  0x23   :  { %311 = vperm.xlu1 %682, %v285_v24  }
  0x26   :  { %316 = vperm.xlu0 %681, %v286_v25   ;;  %v691_v25 = vld [vmem:[%s916_s3 + $0x8] sm:$0xff]  }
  0x27   :  { %321 = vperm.xlu1 %682, %v287_v26   ;;  %v692_v26 = vld [vmem:[%s916_s3 + $0x10] sm:$0xff]  }
  0x2a   :  { %326 = vperm.xlu0 %681, %v288_v27   ;;  %v693_v27 = vld [vmem:[%s916_s3 + $0x18] sm:$0xff]  }
  0x2b   :  { %331 = vperm.xlu1 %682, %v289_v28   ;;  %v694_v28 = vld [vmem:[%s916_s3 + $0x20] sm:$0xff]  }
  0x2e   :  { %336 = vperm.xlu0 %681, %v290_v29   ;;  %v695_v29 = vld [vmem:[%s916_s3 + $0x28] sm:$0xff]  }
  0x2f   :  { %341 = vperm.xlu1 %682, %v291_v30   ;;  %v721_v30 = vmov 0.0  }
  0x30   :  { %661 = vmatprep.subr.bf16.mxu0 %v721_v30  ;;  %673 = vmatprep.mubr.msk.bf16.mxu0 %vm722_vm2, %v721_v30 }
  0x32   :  { %346 = vperm.xlu0 %681, %v292_v31  }
  0x33   :  { %351 = vperm.xlu1 %682, %v293_v32  }
  0x36   :  { %506 = vperm.xlu0 %681, %v503_v33  }
  0x85   :  { %v59_v35 = vpop.permute.xlu0 %58 }
  0x86   :  { %v69_v36 = vpop.permute.xlu1 %68 }
  0x89   :  { %v64_v37 = vpop.permute.xlu0 %63 }
  0x8a   :  { %v74_v38 = vpop.permute.xlu1 %73 }
  0x8d   :  { %v79_v39 = vpop.permute.xlu0 %78 }
  0x8e   :  { %v84_v40 = vpop.permute.xlu1 %83 }
  0x91   :  { %v89_v48 = vpop.permute.xlu0 %88 }
  0x92   :  { %v94_v52 = vpop.permute.xlu1 %93 }
  0x95   :  { %v99_v60 = vpop.permute.xlu0 %98 }
  0x96   :  { %v104_v1 = vpop.permute.xlu1 %103 }
  0x99   :  { %v109_v8 = vpop.permute.xlu0 %108 }
  0x9a   :  { %v114_v13 = vpop.permute.xlu1 %113 }
  0x9d   :  { %v297_v31 = vpop.permute.xlu0 %296 }
  0x9e   :  { %v302_v32 = vpop.permute.xlu1 %301 }
  0xa1   :  { %v307_v33 = vpop.permute.xlu0 %306 }
  0xa2   :  { %v312_v34 = vpop.permute.xlu1 %311 }
  0xdb   :  { %v627_v41 = vpop.f32.mrb[0].mxu0 }
  0xdc   :  { %v214_v42 = vadd.f32 %v627_v41, %v69_v36  ;;  %v205_v43 = vpop.f32.mrb[1].mxu0  ;;  %v322_v36 = vpop.permute.xlu1 %321 }
  0xdd   :  { %v206_v44 = vadd.f32 %v205_v43, %v59_v35  ;;  %v628_v45 = vpop.f32.mrb[2].mxu0  ;;  %v317_v35 = vpop.permute.xlu0 %316 }
  0xde   :  { %v217_v46 = vadd.f32 %v628_v45, %v74_v38  ;;  %v208_v47 = vpop.f32.mrb[3].mxu0  ;;  %v254_v50 = vmax.f32 %v214_v42, 0.0 }
  0xdf   :  { %v209_v49 = vadd.f32 %v208_v47, %v64_v37  ;;  %v252_v53 = vmax.f32 %v206_v44, 0.0 }
  0xe0   :  { %v255_v51 = vmax.f32 %v217_v46, 0.0 }
  0xe1   :  { %v253_v54 = vmax.f32 %v209_v49, 0.0  ;;  %v327_v44 = vpop.permute.xlu0 %326 }
  0xe2   :  { %v277_v55 = vpack.c.bf16 %v255_v51, %v254_v50 }
  0xe3   :  { %v631_v56 = vpop.f32.mrb[4].mxu0  ;;  %v276_v57 = vpack.c.bf16 %v253_v54, %v252_v53 }
  0xe4   :  { %v230_v58 = vadd.f32 %v631_v56, %v89_v48  ;;  %v221_v59 = vpop.f32.mrb[5].mxu0  ;;  %v332_v48 = vpop.permute.xlu1 %331 }
  0xe5   :  { %v222_v61 = vadd.f32 %v221_v59, %v79_v39  ;;  %v632_v62 = vpop.f32.mrb[6].mxu0  ;;  %637 = vmatprep.subr.bf16.mxu1 %v276_v57  ;;  %v337_v56 = vpop.permute.xlu0 %336 }
  0xe6   :  { %v233_v63 = vadd.f32 %v632_v62, %v94_v52  ;;  %v224_v0 = vpop.f32.mrb[7].mxu0  ;;  %638 = vmatpush3.bf16.msra.mxu1 %v276_v57  ;;  %v258_v3 = vmax.f32 %v230_v58, 0.0 }
  0xe7   :  { %v225_v2 = vadd.f32 %v224_v0, %v84_v40  ;;  %639 = vmatprep.subr.bf16.mxu1 %v277_v55  ;;  %v256_v5 = vmax.f32 %v222_v61, 0.0 }
  0xe8   :  { %v259_v4 = vmax.f32 %v233_v63, 0.0  ;;  %v342_v61 = vpop.permute.xlu1 %341 }
  0xe9   :  { %v257_v6 = vmax.f32 %v225_v2, 0.0 }
  0xea   :  { %v279_v7 = vpack.c.bf16 %v259_v4, %v258_v3  ;;  %640 = vmatpush3.bf16.msra.mxu1 %v277_v55  ;;  %v347_v4 = vpop.permute.xlu0 %346 }
  0xeb   :  { %v278_v9 = vpack.c.bf16 %v257_v6, %v256_v5  ;;  %v635_v10 = vpop.f32.mrb[8].mxu0 }
  0xec   :  { %v246_v11 = vadd.f32 %v635_v10, %v109_v8  ;;  %v237_v12 = vpop.f32.mrb[9].mxu0 }
  0xed   :  { %v238_v14 = vadd.f32 %v237_v12, %v99_v60  ;;  %v636_v15 = vpop.f32.mrb[10].mxu0  ;;  %641 = vmatprep.subr.bf16.mxu1 %v278_v9 }
  0xee   :  { %v249_v16 = vadd.f32 %v636_v15, %v114_v13  ;;  %v240_v17 = vpop.f32.mrb[11].mxu0  ;;  %642 = vmatpush3.bf16.msra.mxu1 %v278_v9  ;;  %v262_v19 = vmax.f32 %v246_v11, 0.0  ;;  %v352_v9 = vpop.permute.xlu1 %351 }
  0xef   :  { %v241_v18 = vadd.f32 %v240_v17, %v104_v1  ;;  %643 = vmatprep.subr.bf16.mxu1 %v279_v7  ;;  %v260_v21 = vmax.f32 %v238_v14, 0.0 }
  0xf0   :  { %v263_v20 = vmax.f32 %v249_v16, 0.0 }
  0xf1   :  { %v261_v22 = vmax.f32 %v241_v18, 0.0 }
  0xf2   :  { %v281_v23 = vpack.c.bf16 %v263_v20, %v262_v19  ;;  %644 = vmatpush3.bf16.msra.mxu1 %v279_v7 }
  0xf3   :  { %v280_v24 = vpack.c.bf16 %v261_v22, %v260_v21  ;;  %v496_v21 = vld [vmem:[%s918_s5] sm:$0x1]  ;;  %v509_v22 = vlaneseq }
  0xf5   :  { %645 = vmatprep.subr.bf16.mxu1 %v280_v24 }
  0xf6   :  { %646 = vmatpush3.bf16.msra.mxu1 %v280_v24 }
  0xf7   :  { %647 = vmatprep.subr.bf16.mxu1 %v281_v23 }
  0xfa   :  { %648 = vmatpush3.bf16.msra.mxu1 %v281_v23  ;;  %v510_v23 = vshrl.u32 %v509_v22, 7 }
  0xfc   :  { %v511_v24 = vsub.s32 0, %v510_v23 }
  0xfd   :  { %650 = vmatmul.mubr.msk.bf16.vlgmr.msra.gmra.mrb[0].mxu1 %vm384_vm1, %v691_v25  ;;  %v507_v25 = vpop.permute.xlu0 %506 }
  0xfe   :  { %653 = vmatprep.mubr.msk.bf16.mxu1 %vm384_vm1, %v692_v26  ;;  %v512_v26 = vrot.slane %v507_v25, %v511_v24 }
 0x105   :  { %654 = vmatmul.mubr.msk.bf16.gmra.mrb[4].mxu1 %vm384_vm1, %v693_v27 }
 0x106   :  { %657 = vmatprep.mubr.msk.bf16.mxu1 %vm384_vm1, %v694_v28 }
 0x10d   :  { %658 = vmatmul.mubr.msk.bf16.gmra.mrb[8].mxu1 %vm384_vm1, %v695_v29 }
 0x1d0   :  { %v651_v37 = vpop.f32.mrb[0].mxu1 }
 0x1d1   :  { %v446_v38 = vadd.f32 %v651_v37, %v307_v33  ;;  %v437_v39 = vpop.f32.mrb[1].mxu1 }
 0x1d2   :  { %v438_v40 = vadd.f32 %v437_v39, %v297_v31  ;;  %v652_v41 = vpop.f32.mrb[2].mxu1 }
 0x1d3   :  { %v449_v42 = vadd.f32 %v652_v41, %v312_v34  ;;  %v440_v43 = vpop.f32.mrb[3].mxu1  ;;  %v486_v46 = vmax.f32 %v446_v38, 0.0 }
 0x1d4   :  { %v441_v45 = vadd.f32 %v440_v43, %v302_v32  ;;  %v484_v49 = vmax.f32 %v438_v40, 0.0 }
 0x1d5   :  { %v487_v47 = vmax.f32 %v449_v42, 0.0 }
 0x1d6   :  { %v485_v50 = vmax.f32 %v441_v45, 0.0 }
 0x1d7   :  { %v498_v51 = vpack.c.bf16 %v487_v47, %v486_v46 }
 0x1d8   :  { %v497_v52 = vpack.c.bf16 %v485_v50, %v484_v49  ;;  %v655_v53 = vpop.f32.mrb[4].mxu1 }
 0x1d9   :  { %v462_v54 = vadd.f32 %v655_v53, %v327_v44  ;;  %v453_v55 = vpop.f32.mrb[5].mxu1 }
 0x1da   :  { %v454_v57 = vadd.f32 %v453_v55, %v317_v35  ;;  %v656_v58 = vpop.f32.mrb[6].mxu1  ;;  %662 = vmatpush3.bf16.msra.mxu0 %v497_v52 }
 0x1db   :  { %v465_v59 = vadd.f32 %v656_v58, %v332_v48  ;;  %v456_v60 = vpop.f32.mrb[7].mxu1  ;;  %663 = vmatprep.subr.bf16.mxu0 %v721_v30  ;;  %v490_v63 = vmax.f32 %v462_v54, 0.0 }
 0x1dc   :  { %v457_v62 = vadd.f32 %v456_v60, %v322_v36  ;;  %v488_v1 = vmax.f32 %v454_v57, 0.0 }
 0x1dd   :  { %v491_v0 = vmax.f32 %v465_v59, 0.0 }
 0x1de   :  { %v489_v2 = vmax.f32 %v457_v62, 0.0  ;;  %664 = vmatpush3.bf16.msra.mxu0 %v498_v51 }
 0x1df   :  { %v500_v3 = vpack.c.bf16 %v491_v0, %v490_v63  ;;  %665 = vmatprep.subr.bf16.mxu0 %v721_v30 }
 0x1e0   :  { %v499_v5 = vpack.c.bf16 %v489_v2, %v488_v1  ;;  %v659_v6 = vpop.f32.mrb[8].mxu1 }
 0x1e1   :  { %v478_v7 = vadd.f32 %v659_v6, %v347_v4  ;;  %v469_v8 = vpop.f32.mrb[9].mxu1 }
 0x1e2   :  { %v470_v10 = vadd.f32 %v469_v8, %v337_v56  ;;  %v660_v11 = vpop.f32.mrb[10].mxu1  ;;  %666 = vmatpush3.bf16.msra.mxu0 %v499_v5 }
 0x1e3   :  { %v481_v12 = vadd.f32 %v660_v11, %v352_v9  ;;  %v472_v13 = vpop.f32.mrb[11].mxu1  ;;  %667 = vmatprep.subr.bf16.mxu0 %v721_v30  ;;  %v494_v15 = vmax.f32 %v478_v7, 0.0 }
 0x1e4   :  { %v473_v14 = vadd.f32 %v472_v13, %v342_v61  ;;  %v492_v17 = vmax.f32 %v470_v10, 0.0 }
 0x1e5   :  { %v495_v16 = vmax.f32 %v481_v12, 0.0 }
 0x1e6   :  { %v493_v18 = vmax.f32 %v473_v14, 0.0  ;;  %668 = vmatpush3.bf16.msra.mxu0 %v500_v3 }
 0x1e7   :  { %v502_v19 = vpack.c.bf16 %v495_v16, %v494_v15  ;;  %669 = vmatprep.subr.bf16.mxu0 %v721_v30 }
 0x1e8   :  { %v501_v20 = vpack.c.bf16 %v493_v18, %v492_v17 }
 0x1ea   :  { %670 = vmatpush3.bf16.msra.mxu0 %v501_v20 }
 0x1eb   :  { %671 = vmatprep.subr.bf16.mxu0 %v721_v30 }
 0x1ee   :  { %672 = vmatpush3.bf16.msra.mxu0 %v502_v19 }
 0x1f1   :  { %674 = vmatmul.mubr.msk.bf16.vlgmr.msra.gmra.mrb[12].mxu0 %vm384_vm1, %v496_v21 }
 0x2c4   :  { %v550_v27 = vpop.f32.mrb[12].mxu0 }
 0x2c5   :  { %v551_v28 = vadd.f32 %v550_v27, %v512_v26  ;;  %v675_v29 = vpop.f32.mrb[13].mxu0 }
 0x2c6   :  { %v553_v31 = vpop.f32.mrb[14].mxu0 }
 0x2c7   :  { %556 = vst [vmem:[#allocation3] sm:$0x1] %v551_v28  ;;  %v676_v30 = vpop.f32.mrb[15].mxu0 }
 0x2c8   :  { %707 = shalt.err (!%p704_p4)
}
 0x2c9   :  { %s708_s26 = scalar_lea.hbm %s920_s7, 16 }
 0x2ca   :  { %p709_p5 = scmp.ne.s32.totalorder %s920_s7, %s708_s26  ;;  %p712_p6 = scmp.lt.u32.totalorder %s708_s26, %s920_s7 }
 0x2cc   :  { %p714_p7 = pnand %p712_p6, %p709_p5 }
 0x2ce   :  { %717 = shalt.err (!%p714_p7)
}
 0x2cf   :  { %566 = dma.vmem_to_hbm [thread:$0]  %s564_s22, 16, %s920_s7, [#allocation4]  }
 0x2d0   :  { %718 = dma.done.wait [#allocation4], 16  }
 0x2d1   :  { %719 = vsyncadd [#allocation4], 4294967280 }
 0x2d2   :  { %570 = vsyncpa [#allocation4], 1 }

</bundles_post_ra>
